<compile_context>
chip_gen: v6e
topology: v6e:2x2x1
jax: 0.10.0
libtpu: 0.0.40
codegen_flags: <defaults>
</compile_context>

<pallas_src>
import functools

import jax
import jax.numpy as jnp
from jax import lax
from jax.experimental import pallas as pl
from jax.experimental.pallas import tpu as pltpu


def _smoothness_kernel(flow_ref, img_ref, halo_ref, out_ref, *,
                       edge_constant, inv_c, gaussian, valid_h, valid_w,
                       tile_h):
    """One (batch, row-tile) grid step.

    flow_ref : [Cf, tile_h, Wp]        native dtype (VMEM)
    img_ref  : [C,  tile_h, Wp]        native dtype (VMEM)
    halo_ref : [num_h, Cf + C, Wp] f32 (VMEM, resident per batch)
    out_ref  : [2, 8, Wp] f32          per-batch per-lane partial sums
                                       (accumulator across the row-tile axis)
    """
    h = pl.program_id(1)

    @pl.when(h == 0)
    def _init():
        out_ref[...] = jnp.zeros_like(out_ref)

    flow = flow_ref[...].astype(jnp.float32)          # (Cf, tile_h, Wp)
    img = img_ref[...].astype(jnp.float32)            # (C,  tile_h, Wp)
    cf = flow.shape[0]
    c = img.shape[0]
    wp = flow.shape[-1]

    halo = halo_ref[h]                                # (Cf + C, Wp) f32

    row = lax.broadcasted_iota(jnp.int32, (tile_h, wp), 0)
    col = lax.broadcasted_iota(jnp.int32, (tile_h, wp), 1)
    grow = row + h * tile_h                           # global row index

    def next_col(x2d):
        # result[i, j] = x2d[i, j + 1]  (wrap column masked out later)
        return pltpu.roll(x2d, wp - 1, axis=1)

    def next_row(x2d, halo_row):
        # result[i, :] = x2d[i + 1, :]; last tile row comes from the halo.
        r = pltpu.roll(x2d, tile_h - 1, axis=0)
        return jnp.where(row == tile_h - 1, halo_row[None, :], r)

    def weight(img_abs_sum):
        m = img_abs_sum * inv_c                       # mean over channels
        arg = m * m if gaussian else m
        return jnp.exp(-edge_constant * arg)

    # ---- x direction ------------------------------------------------------
    fx = jnp.zeros((tile_h, wp), jnp.float32)
    for ch in range(cf):
        fx = fx + jnp.abs(flow[ch] - next_col(flow[ch]))
    ix = jnp.zeros((tile_h, wp), jnp.float32)
    for ch in range(c):
        ix = ix + jnp.abs(img[ch] - next_col(img[ch]))
    mask_x = jnp.logical_and(col < valid_w - 1, grow < valid_h)
    px = jnp.where(mask_x, fx * weight(ix), 0.0)

    # ---- y direction (tile-boundary row supplied by the halo) --------------
    fy = jnp.zeros((tile_h, wp), jnp.float32)
    for ch in range(cf):
        fy = fy + jnp.abs(flow[ch] - next_row(flow[ch], halo[ch]))
    iy = jnp.zeros((tile_h, wp), jnp.float32)
    for ch in range(c):
        iy = iy + jnp.abs(img[ch] - next_row(img[ch], halo[cf + ch]))
    mask_y = jnp.logical_and(col < valid_w, grow < valid_h - 1)
    py = jnp.where(mask_y, fy * weight(iy), 0.0)

    # ---- per-lane partial accumulation (fold rows into 8 sublanes) ---------
    px8 = jnp.sum(px.reshape(tile_h // 8, 8, wp), axis=0)
    py8 = jnp.sum(py.reshape(tile_h // 8, 8, wp), axis=0)
    out_ref[0, :, :] = out_ref[0, :, :] + px8
    out_ref[1, :, :] = out_ref[1, :, :] + py8


def _round_up(x, m):
    return (x + m - 1) // m * m


def _pick_tile_h(hp, wp, n_chan, itemsize, g, budget_bytes):
    """Largest tile_h (multiple of g, divisor of hp) whose estimated working
    set (double-buffered native inputs + f32 in-kernel temporaries) fits."""
    best = g
    th = g
    while th <= hp:
        if hp % th == 0:
            est = 2 * n_chan * th * wp * itemsize          # 2x pipeline buffers
            est += 6 * (n_chan + 2) * th * wp * 4          # f32 temporaries
            if est <= budget_bytes:
                best = th
        th += g
    return best


def smoothness_loss_pallas(flow, image, *, edge_constant=150.0,
                           edge_weighting="exponential", tile_h=None):
    """Edge-aware first-order SmoothnessLoss forward.

    flow:  [B, 2, H, W]   (any float dtype; kept native for the DMA)
    image: [B, C, H, W]
    returns: scalar float32
    """
    assert edge_weighting in ("exponential", "gaussian")
    B, Cf, H, W = flow.shape
    Bi, C, Hi, Wi = image.shape
    assert (B, H, W) == (Bi, Hi, Wi), "flow / image batch+spatial dims must match"
    assert H >= 2 and W >= 2, "need at least 2x2 spatial extent"

    # Sublane granularity from the narrowest input dtype (bf16 packs 16 rows).
    min_isz = min(flow.dtype.itemsize, image.dtype.itemsize)
    g = 8 if min_isz >= 4 else (16 if min_isz == 2 else 32)

    # Pad H to the sublane granularity and W to a lane-dense multiple of 128
    # (no-op copies when already aligned).  Exact denominators use H, W.
    Hp = _round_up(H, g)
    Wp = _round_up(W, 128)
    if (Hp, Wp) != (H, W):
        pad = ((0, 0), (0, 0), (0, Hp - H), (0, Wp - W))
        flow = jnp.pad(flow, pad)
        image = jnp.pad(image, pad)

    # Generation-aware VMEM limit and byte-budgeted tile size.
    try:
        vmem_cap = int(pltpu.get_tpu_info().vmem_capacity_bytes)
    except Exception:
        vmem_cap = 64 * 1024 * 1024                     # v7x-safe fallback
    vmem_limit = min(int(vmem_cap * 0.8), 100 * 1024 * 1024)

    if tile_h is None:
        max_isz = max(flow.dtype.itemsize, image.dtype.itemsize)
        tile_h = _pick_tile_h(Hp, Wp, Cf + C, max_isz, g, vmem_limit // 2)
    assert Hp % tile_h == 0 and tile_h % 8 == 0
    num_h = Hp // tile_h

    # Halo = first row of the next row-tile (dummy masked row for the last
    # tile); flow + image merged, ~1/tile_h of input bytes, DMA'd per batch.
    def _next_rows(x):                                   # (B, Cc, Hp, Wp)
        nxt = jnp.concatenate([x[:, :, tile_h::tile_h, :], x[:, :, Hp - 1:, :]],
                              axis=2)                    # (B, Cc, num_h, Wp)
        return jnp.transpose(nxt, (0, 2, 1, 3)).astype(jnp.float32)

    halo = jnp.concatenate([_next_rows(flow), _next_rows(image)], axis=2)

    kernel = functools.partial(
        _smoothness_kernel,
        edge_constant=float(edge_constant), inv_c=1.0 / float(C),
        gaussian=(edge_weighting == "gaussian"),
        valid_h=H, valid_w=W, tile_h=tile_h)

    npix = B * Hp * Wp
    cost = pl.CostEstimate(
        flops=int(npix * (8 * (Cf + C) + 16)),
        transcendentals=int(2 * npix),
        bytes_accessed=int(flow.size * flow.dtype.itemsize
                           + image.size * image.dtype.itemsize
                           + halo.size * 4 + B * 2 * 8 * Wp * 4),
    )

    partials = pl.pallas_call(
        kernel,
        out_shape=jax.ShapeDtypeStruct((B, 2, 8, Wp), jnp.float32),
        grid_spec=pltpu.PrefetchScalarGridSpec(
            num_scalar_prefetch=0,
            grid=(B, num_h),
            in_specs=[
                pl.BlockSpec((pl.Squeezed(), Cf, tile_h, Wp),
                             lambda b, h: (b, 0, h, 0)),
                pl.BlockSpec((pl.Squeezed(), C, tile_h, Wp),
                             lambda b, h: (b, 0, h, 0)),
                # Halo: indexed by b only -> DMA'd once per batch, VMEM-resident.
                pl.BlockSpec((pl.Squeezed(), num_h, Cf + C, Wp),
                             lambda b, h: (b, 0, 0, 0)),
            ],
            # Per-batch per-lane partial sums; same block across the h axis ->
            # VMEM-resident accumulator.
            out_specs=pl.BlockSpec((pl.Squeezed(), 2, 8, Wp),
                                   lambda b, h: (b, 0, 0, 0)),
        ),
        compiler_params=pltpu.CompilerParams(
            # Batch axis parallel (v7x megacore); row-tile (reduction) axis last.
            dimension_semantics=("parallel", "arbitrary"),
            vmem_limit_bytes=vmem_limit,
        ),
        cost_estimate=cost,
    )(flow, image, halo)

    inv_nx = 1.0 / float(B * Cf * H * (W - 1))
    inv_ny = 1.0 / float(B * Cf * (H - 1) * W)
    return 0.5 * (jnp.sum(partials[:, 0]) * inv_nx
                  + jnp.sum(partials[:, 1]) * inv_ny)


def smoothness_loss_ref(flow, image, *, edge_constant=150.0):
    """Pure-JAX reference mirroring the PyTorch forward (default config)."""
    flow = flow.astype(jnp.float32)
    image = image.astype(jnp.float32)
    flow_gx = flow[:, :, :, :-1] - flow[:, :, :, 1:]
    flow_gy = flow[:, :, :-1, :] - flow[:, :, 1:, :]
    img_gx = image[:, :, :, :-1] - image[:, :, :, 1:]
    img_gy = image[:, :, :-1, :] - image[:, :, 1:, :]
    wx = jnp.exp(-edge_constant * jnp.mean(jnp.abs(img_gx), axis=1, keepdims=True))
    wy = jnp.exp(-edge_constant * jnp.mean(jnp.abs(img_gy), axis=1, keepdims=True))
    return (jnp.mean(jnp.abs(flow_gx * wx)) + jnp.mean(jnp.abs(flow_gy * wy))) / 2.0


if __name__ == "__main__":
    key = jax.random.PRNGKey(0)
    k_flow, k_img = jax.random.split(key)

    B, H, W = 2, 16, 16
    C = 3  # reference image channels

    flow = jax.random.normal(k_flow, (B, 2, H, W), dtype=jnp.float32)
    image = jax.random.uniform(k_img, (B, C, H, W), dtype=jnp.float32)

    # tile_h=8 -> two row-tiles per batch, exercising the halo/boundary path.
    loss = smoothness_loss_pallas(flow, image, tile_h=8)
    loss = jax.block_until_ready(loss)

    ref = jax.block_until_ready(smoothness_loss_ref(flow, image))
    assert jnp.allclose(loss, ref, rtol=1e-4, atol=1e-6), (loss, ref)

    print("KERNEL_OK")
</pallas_src>

<mosaic_0001>
module attributes {stable_mosaic.version = 11 : i64} {
  func.func @_smoothness_kernel(%arg0: i32, %arg1: i32, %arg2: memref<1x2x8x128xf32, #tpu.memory_space<vmem>>, %arg3: memref<1x3x8x128xf32, #tpu.memory_space<vmem>>, %arg4: memref<1x2x5x128xf32, #tpu.memory_space<vmem>>, %arg5: memref<1x2x8x128xf32, #tpu.memory_space<vmem>>) attributes {dimension_semantics = [#tpu.dimension_semantics<parallel>, #tpu.dimension_semantics<arbitrary>], iteration_bounds = array<i64: 2, 2>, scalar_prefetch = 0 : i64, scratch_operands = 0 : i64, tpu.core_type = #tpu.core_type<tc>, window_params = [{transform_indices = @transform_0, window_bounds = array<i64: 1, 2, 8, 128>}, {transform_indices = @transform_1, window_bounds = array<i64: 1, 3, 8, 128>}, {transform_indices = @transform_2, window_bounds = array<i64: 1, 2, 5, 128>}, {transform_indices = @transform_3, window_bounds = array<i64: 1, 2, 8, 128>}]} {
    %c0_i32 = arith.constant 0 : i32
    %0 = arith.cmpi eq, %arg1, %c0_i32 : i32
    %1 = arith.extui %0 : i1 to i32
    %c0_i32_0 = arith.constant 0 : i32
    %2 = arith.cmpi ne, %1, %c0_i32_0 : i32
    scf.if %2 {
      %cst_52 = arith.constant 0.000000e+00 : f32
      %181 = vector.broadcast %cst_52 : f32 to vector<2x8x128xf32>
      %c0_53 = arith.constant 0 : index
      %c0_54 = arith.constant 0 : index
      %c0_55 = arith.constant 0 : index
      %c0_56 = arith.constant 0 : index
      %182 = vector.load %arg5[%c0_53, %c0_54, %c0_55, %c0_56] : memref<1x2x8x128xf32, #tpu.memory_space<vmem>>, vector<1x2x8x128xf32>
      %183 = vector.shape_cast %182 : vector<1x2x8x128xf32> to vector<2x8x128xf32>
      %184 = vector.shape_cast %181 : vector<2x8x128xf32> to vector<1x2x8x128xf32>
      tpu.vector_store %arg5[%c0_53, %c0_54, %c0_55, %c0_56], %184 {strides = array<i32>} : memref<1x2x8x128xf32, #tpu.memory_space<vmem>>, vector<1x2x8x128xf32>,
    } else {
    }
    %c0 = arith.constant 0 : index
    %c0_1 = arith.constant 0 : index
    %c0_2 = arith.constant 0 : index
    %c0_3 = arith.constant 0 : index
    %3 = vector.load %arg2[%c0, %c0_1, %c0_2, %c0_3] : memref<1x2x8x128xf32, #tpu.memory_space<vmem>>, vector<1x2x8x128xf32>
    %4 = vector.shape_cast %3 : vector<1x2x8x128xf32> to vector<2x8x128xf32>
    %c0_4 = arith.constant 0 : index
    %c0_5 = arith.constant 0 : index
    %c0_6 = arith.constant 0 : index
    %c0_7 = arith.constant 0 : index
    %5 = vector.load %arg3[%c0_4, %c0_5, %c0_6, %c0_7] : memref<1x3x8x128xf32, #tpu.memory_space<vmem>>, vector<1x3x8x128xf32>
    %6 = vector.shape_cast %5 : vector<1x3x8x128xf32> to vector<3x8x128xf32>
    %c0_8 = arith.constant 0 : index
    %7 = arith.index_cast %arg1 : i32 to index
    %c0_9 = arith.constant 0 : index
    %c0_10 = arith.constant 0 : index
    %8 = vector.load %arg4[%c0_8, %7, %c0_9, %c0_10] : memref<1x2x5x128xf32, #tpu.memory_space<vmem>>, vector<1x1x5x128xf32>
    %9 = vector.shape_cast %8 : vector<1x1x5x128xf32> to vector<5x128xf32>
    %10 = tpu.iota {dimensions = array<i32: 0>} : vector<8x128xi32>
    %11 = tpu.iota {dimensions = array<i32: 1>} : vector<8x128xi32>
    %c8_i32 = arith.constant 8 : i32
    %12 = arith.muli %arg1, %c8_i32 : i32
    %13 = vector.broadcast %12 : i32 to vector<8x128xi32>
    %14 = arith.addi %10, %13 : vector<8x128xi32>
    %cst = arith.constant 0.000000e+00 : f32
    %15 = vector.broadcast %cst : f32 to vector<8x128xf32>
    %16 = vector.extract_strided_slice %4 {offsets = [0, 0, 0], sizes = [1, 8, 128], strides = [1, 1, 1]} : vector<2x8x128xf32> to vector<1x8x128xf32>
    %17 = vector.shape_cast %16 : vector<1x8x128xf32> to vector<8x128xf32>
    %18 = vector.extract_strided_slice %4 {offsets = [0, 0, 0], sizes = [1, 8, 128], strides = [1, 1, 1]} : vector<2x8x128xf32> to vector<1x8x128xf32>
    %19 = vector.shape_cast %18 : vector<1x8x128xf32> to vector<8x128xf32>
    %c127_i32 = arith.constant 127 : i32
    %20 = tpu.dynamic_rotate %19 by %c127_i32 dim 1 : vector<8x128xf32>, i32 -> vector<8x128xf32>
    %21 = arith.subf %17, %20 : vector<8x128xf32>
    %22 = math.absf %21 : vector<8x128xf32>
    %23 = arith.addf %15, %22 : vector<8x128xf32>
    %24 = vector.extract_strided_slice %4 {offsets = [1, 0, 0], sizes = [1, 8, 128], strides = [1, 1, 1]} : vector<2x8x128xf32> to vector<1x8x128xf32>
    %25 = vector.shape_cast %24 : vector<1x8x128xf32> to vector<8x128xf32>
    %26 = vector.extract_strided_slice %4 {offsets = [1, 0, 0], sizes = [1, 8, 128], strides = [1, 1, 1]} : vector<2x8x128xf32> to vector<1x8x128xf32>
    %27 = vector.shape_cast %26 : vector<1x8x128xf32> to vector<8x128xf32>
    %c127_i32_11 = arith.constant 127 : i32
    %28 = tpu.dynamic_rotate %27 by %c127_i32_11 dim 1 : vector<8x128xf32>, i32 -> vector<8x128xf32>
    %29 = arith.subf %25, %28 : vector<8x128xf32>
    %30 = math.absf %29 : vector<8x128xf32>
    %31 = arith.addf %23, %30 : vector<8x128xf32>
    %cst_12 = arith.constant 0.000000e+00 : f32
    %32 = vector.broadcast %cst_12 : f32 to vector<8x128xf32>
    %33 = vector.extract_strided_slice %6 {offsets = [0, 0, 0], sizes = [1, 8, 128], strides = [1, 1, 1]} : vector<3x8x128xf32> to vector<1x8x128xf32>
    %34 = vector.shape_cast %33 : vector<1x8x128xf32> to vector<8x128xf32>
    %35 = vector.extract_strided_slice %6 {offsets = [0, 0, 0], sizes = [1, 8, 128], strides = [1, 1, 1]} : vector<3x8x128xf32> to vector<1x8x128xf32>
    %36 = vector.shape_cast %35 : vector<1x8x128xf32> to vector<8x128xf32>
    %c127_i32_13 = arith.constant 127 : i32
    %37 = tpu.dynamic_rotate %36 by %c127_i32_13 dim 1 : vector<8x128xf32>, i32 -> vector<8x128xf32>
    %38 = arith.subf %34, %37 : vector<8x128xf32>
    %39 = math.absf %38 : vector<8x128xf32>
    %40 = arith.addf %32, %39 : vector<8x128xf32>
    %41 = vector.extract_strided_slice %6 {offsets = [1, 0, 0], sizes = [1, 8, 128], strides = [1, 1, 1]} : vector<3x8x128xf32> to vector<1x8x128xf32>
    %42 = vector.shape_cast %41 : vector<1x8x128xf32> to vector<8x128xf32>
    %43 = vector.extract_strided_slice %6 {offsets = [1, 0, 0], sizes = [1, 8, 128], strides = [1, 1, 1]} : vector<3x8x128xf32> to vector<1x8x128xf32>
    %44 = vector.shape_cast %43 : vector<1x8x128xf32> to vector<8x128xf32>
    %c127_i32_14 = arith.constant 127 : i32
    %45 = tpu.dynamic_rotate %44 by %c127_i32_14 dim 1 : vector<8x128xf32>, i32 -> vector<8x128xf32>
    %46 = arith.subf %42, %45 : vector<8x128xf32>
    %47 = math.absf %46 : vector<8x128xf32>
    %48 = arith.addf %40, %47 : vector<8x128xf32>
    %49 = vector.extract_strided_slice %6 {offsets = [2, 0, 0], sizes = [1, 8, 128], strides = [1, 1, 1]} : vector<3x8x128xf32> to vector<1x8x128xf32>
    %50 = vector.shape_cast %49 : vector<1x8x128xf32> to vector<8x128xf32>
    %51 = vector.extract_strided_slice %6 {offsets = [2, 0, 0], sizes = [1, 8, 128], strides = [1, 1, 1]} : vector<3x8x128xf32> to vector<1x8x128xf32>
    %52 = vector.shape_cast %51 : vector<1x8x128xf32> to vector<8x128xf32>
    %c127_i32_15 = arith.constant 127 : i32
    %53 = tpu.dynamic_rotate %52 by %c127_i32_15 dim 1 : vector<8x128xf32>, i32 -> vector<8x128xf32>
    %54 = arith.subf %50, %53 : vector<8x128xf32>
    %55 = math.absf %54 : vector<8x128xf32>
    %56 = arith.addf %48, %55 : vector<8x128xf32>
    %c15_i32 = arith.constant 15 : i32
    %57 = vector.broadcast %c15_i32 : i32 to vector<8x128xi32>
    %58 = arith.cmpi slt, %11, %57 : vector<8x128xi32>
    %c16_i32 = arith.constant 16 : i32
    %59 = vector.broadcast %c16_i32 : i32 to vector<8x128xi32>
    %60 = arith.cmpi slt, %14, %59 : vector<8x128xi32>
    %61 = arith.andi %58, %60 : vector<8x128xi1>
    %cst_16 = arith.constant 0.333333343 : f32
    %62 = vector.broadcast %cst_16 : f32 to vector<8x128xf32>
    %63 = arith.mulf %56, %62 : vector<8x128xf32>
    %cst_17 = arith.constant -1.500000e+02 : f32
    %64 = vector.broadcast %cst_17 : f32 to vector<8x128xf32>
    %65 = arith.mulf %64, %63 : vector<8x128xf32>
    %66 = math.exp %65 : vector<8x128xf32>
    %67 = arith.mulf %31, %66 : vector<8x128xf32>
    %cst_18 = arith.constant 0.000000e+00 : f32
    %68 = vector.broadcast %cst_18 : f32 to vector<8x128xf32>
    %69 = arith.select %61, %67, %68 : vector<8x128xi1>, vector<8x128xf32>
    %cst_19 = arith.constant 0.000000e+00 : f32
    %70 = vector.broadcast %cst_19 : f32 to vector<8x128xf32>
    %71 = vector.extract_strided_slice %4 {offsets = [0, 0, 0], sizes = [1, 8, 128], strides = [1, 1, 1]} : vector<2x8x128xf32> to vector<1x8x128xf32>
    %72 = vector.shape_cast %71 : vector<1x8x128xf32> to vector<8x128xf32>
    %73 = vector.extract_strided_slice %4 {offsets = [0, 0, 0], sizes = [1, 8, 128], strides = [1, 1, 1]} : vector<2x8x128xf32> to vector<1x8x128xf32>
    %74 = vector.shape_cast %73 : vector<1x8x128xf32> to vector<8x128xf32>
    %75 = vector.extract_strided_slice %9 {offsets = [0, 0], sizes = [1, 128], strides = [1, 1]} : vector<5x128xf32> to vector<1x128xf32>
    %76 = vector.shape_cast %75 : vector<1x128xf32> to vector<128xf32>
    %c7_i32 = arith.constant 7 : i32
    %77 = tpu.dynamic_rotate %74 by %c7_i32 dim 0 : vector<8x128xf32>, i32 -> vector<8x128xf32>
    %c7_i32_20 = arith.constant 7 : i32
    %78 = vector.broadcast %c7_i32_20 : i32 to vector<8x128xi32>
    %79 = arith.cmpi eq, %10, %78 : vector<8x128xi32>
    %80 = vector.shape_cast %76 : vector<128xf32> to vector<1x128xf32>
    %81 = vector.shape_cast %80 : vector<1x128xf32> to vector<1x128xf32>
    %82 = vector.broadcast %81 : vector<1x128xf32> to vector<8x128xf32>
    %83 = arith.select %79, %82, %77 : vector<8x128xi1>, vector<8x128xf32>
    %84 = arith.subf %72, %83 : vector<8x128xf32>
    %85 = math.absf %84 : vector<8x128xf32>
    %86 = arith.addf %70, %85 : vector<8x128xf32>
    %87 = vector.extract_strided_slice %4 {offsets = [1, 0, 0], sizes = [1, 8, 128], strides = [1, 1, 1]} : vector<2x8x128xf32> to vector<1x8x128xf32>
    %88 = vector.shape_cast %87 : vector<1x8x128xf32> to vector<8x128xf32>
    %89 = vector.extract_strided_slice %4 {offsets = [1, 0, 0], sizes = [1, 8, 128], strides = [1, 1, 1]} : vector<2x8x128xf32> to vector<1x8x128xf32>
    %90 = vector.shape_cast %89 : vector<1x8x128xf32> to vector<8x128xf32>
    %91 = vector.extract_strided_slice %9 {offsets = [1, 0], sizes = [1, 128], strides = [1, 1]} : vector<5x128xf32> to vector<1x128xf32>
    %92 = vector.shape_cast %91 : vector<1x128xf32> to vector<128xf32>
    %c7_i32_21 = arith.constant 7 : i32
    %93 = tpu.dynamic_rotate %90 by %c7_i32_21 dim 0 : vector<8x128xf32>, i32 -> vector<8x128xf32>
    %c7_i32_22 = arith.constant 7 : i32
    %94 = vector.broadcast %c7_i32_22 : i32 to vector<8x128xi32>
    %95 = arith.cmpi eq, %10, %94 : vector<8x128xi32>
    %96 = vector.shape_cast %92 : vector<128xf32> to vector<1x128xf32>
    %97 = vector.shape_cast %96 : vector<1x128xf32> to vector<1x128xf32>
    %98 = vector.broadcast %97 : vector<1x128xf32> to vector<8x128xf32>
    %99 = arith.select %95, %98, %93 : vector<8x128xi1>, vector<8x128xf32>
    %100 = arith.subf %88, %99 : vector<8x128xf32>
    %101 = math.absf %100 : vector<8x128xf32>
    %102 = arith.addf %86, %101 : vector<8x128xf32>
    %cst_23 = arith.constant 0.000000e+00 : f32
    %103 = vector.broadcast %cst_23 : f32 to vector<8x128xf32>
    %104 = vector.extract_strided_slice %6 {offsets = [0, 0, 0], sizes = [1, 8, 128], strides = [1, 1, 1]} : vector<3x8x128xf32> to vector<1x8x128xf32>
    %105 = vector.shape_cast %104 : vector<1x8x128xf32> to vector<8x128xf32>
    %106 = vector.extract_strided_slice %6 {offsets = [0, 0, 0], sizes = [1, 8, 128], strides = [1, 1, 1]} : vector<3x8x128xf32> to vector<1x8x128xf32>
    %107 = vector.shape_cast %106 : vector<1x8x128xf32> to vector<8x128xf32>
    %108 = vector.extract_strided_slice %9 {offsets = [2, 0], sizes = [1, 128], strides = [1, 1]} : vector<5x128xf32> to vector<1x128xf32>
    %109 = vector.shape_cast %108 : vector<1x128xf32> to vector<128xf32>
    %c7_i32_24 = arith.constant 7 : i32
    %110 = tpu.dynamic_rotate %107 by %c7_i32_24 dim 0 : vector<8x128xf32>, i32 -> vector<8x128xf32>
    %c7_i32_25 = arith.constant 7 : i32
    %111 = vector.broadcast %c7_i32_25 : i32 to vector<8x128xi32>
    %112 = arith.cmpi eq, %10, %111 : vector<8x128xi32>
    %113 = vector.shape_cast %109 : vector<128xf32> to vector<1x128xf32>
    %114 = vector.shape_cast %113 : vector<1x128xf32> to vector<1x128xf32>
    %115 = vector.broadcast %114 : vector<1x128xf32> to vector<8x128xf32>
    %116 = arith.select %112, %115, %110 : vector<8x128xi1>, vector<8x128xf32>
    %117 = arith.subf %105, %116 : vector<8x128xf32>
    %118 = math.absf %117 : vector<8x128xf32>
    %119 = arith.addf %103, %118 : vector<8x128xf32>
    %120 = vector.extract_strided_slice %6 {offsets = [1, 0, 0], sizes = [1, 8, 128], strides = [1, 1, 1]} : vector<3x8x128xf32> to vector<1x8x128xf32>
    %121 = vector.shape_cast %120 : vector<1x8x128xf32> to vector<8x128xf32>
    %122 = vector.extract_strided_slice %6 {offsets = [1, 0, 0], sizes = [1, 8, 128], strides = [1, 1, 1]} : vector<3x8x128xf32> to vector<1x8x128xf32>
    %123 = vector.shape_cast %122 : vector<1x8x128xf32> to vector<8x128xf32>
    %124 = vector.extract_strided_slice %9 {offsets = [3, 0], sizes = [1, 128], strides = [1, 1]} : vector<5x128xf32> to vector<1x128xf32>
    %125 = vector.shape_cast %124 : vector<1x128xf32> to vector<128xf32>
    %c7_i32_26 = arith.constant 7 : i32
    %126 = tpu.dynamic_rotate %123 by %c7_i32_26 dim 0 : vector<8x128xf32>, i32 -> vector<8x128xf32>
    %c7_i32_27 = arith.constant 7 : i32
    %127 = vector.broadcast %c7_i32_27 : i32 to vector<8x128xi32>
    %128 = arith.cmpi eq, %10, %127 : vector<8x128xi32>
    %129 = vector.shape_cast %125 : vector<128xf32> to vector<1x128xf32>
    %130 = vector.shape_cast %129 : vector<1x128xf32> to vector<1x128xf32>
    %131 = vector.broadcast %130 : vector<1x128xf32> to vector<8x128xf32>
    %132 = arith.select %128, %131, %126 : vector<8x128xi1>, vector<8x128xf32>
    %133 = arith.subf %121, %132 : vector<8x128xf32>
    %134 = math.absf %133 : vector<8x128xf32>
    %135 = arith.addf %119, %134 : vector<8x128xf32>
    %136 = vector.extract_strided_slice %6 {offsets = [2, 0, 0], sizes = [1, 8, 128], strides = [1, 1, 1]} : vector<3x8x128xf32> to vector<1x8x128xf32>
    %137 = vector.shape_cast %136 : vector<1x8x128xf32> to vector<8x128xf32>
    %138 = vector.extract_strided_slice %6 {offsets = [2, 0, 0], sizes = [1, 8, 128], strides = [1, 1, 1]} : vector<3x8x128xf32> to vector<1x8x128xf32>
    %139 = vector.shape_cast %138 : vector<1x8x128xf32> to vector<8x128xf32>
    %140 = vector.extract_strided_slice %9 {offsets = [4, 0], sizes = [1, 128], strides = [1, 1]} : vector<5x128xf32> to vector<1x128xf32>
    %141 = vector.shape_cast %140 : vector<1x128xf32> to vector<128xf32>
    %c7_i32_28 = arith.constant 7 : i32
    %142 = tpu.dynamic_rotate %139 by %c7_i32_28 dim 0 : vector<8x128xf32>, i32 -> vector<8x128xf32>
    %c7_i32_29 = arith.constant 7 : i32
    %143 = vector.broadcast %c7_i32_29 : i32 to vector<8x128xi32>
    %144 = arith.cmpi eq, %10, %143 : vector<8x128xi32>
    %145 = vector.shape_cast %141 : vector<128xf32> to vector<1x128xf32>
    %146 = vector.shape_cast %145 : vector<1x128xf32> to vector<1x128xf32>
    %147 = vector.broadcast %146 : vector<1x128xf32> to vector<8x128xf32>
    %148 = arith.select %144, %147, %142 : vector<8x128xi1>, vector<8x128xf32>
    %149 = arith.subf %137, %148 : vector<8x128xf32>
    %150 = math.absf %149 : vector<8x128xf32>
    %151 = arith.addf %135, %150 : vector<8x128xf32>
    %c16_i32_30 = arith.constant 16 : i32
    %152 = vector.broadcast %c16_i32_30 : i32 to vector<8x128xi32>
    %153 = arith.cmpi slt, %11, %152 : vector<8x128xi32>
    %c15_i32_31 = arith.constant 15 : i32
    %154 = vector.broadcast %c15_i32_31 : i32 to vector<8x128xi32>
    %155 = arith.cmpi slt, %14, %154 : vector<8x128xi32>
    %156 = arith.andi %153, %155 : vector<8x128xi1>
    %cst_32 = arith.constant 0.333333343 : f32
    %157 = vector.broadcast %cst_32 : f32 to vector<8x128xf32>
    %158 = arith.mulf %151, %157 : vector<8x128xf32>
    %cst_33 = arith.constant -1.500000e+02 : f32
    %159 = vector.broadcast %cst_33 : f32 to vector<8x128xf32>
    %160 = arith.mulf %159, %158 : vector<8x128xf32>
    %161 = math.exp %160 : vector<8x128xf32>
    %162 = arith.mulf %102, %161 : vector<8x128xf32>
    %cst_34 = arith.constant 0.000000e+00 : f32
    %163 = vector.broadcast %cst_34 : f32 to vector<8x128xf32>
    %164 = arith.select %156, %162, %163 : vector<8x128xi1>, vector<8x128xf32>
    %165 = vector.shape_cast %69 : vector<8x128xf32> to vector<1x8x128xf32>
    %cst_35 = arith.constant dense<0.000000e+00> : vector<8x128xf32>
    %166 = vector.multi_reduction <add>, %165, %cst_35 [0] : vector<1x8x128xf32> to vector<8x128xf32>
    %167 = vector.shape_cast %164 : vector<8x128xf32> to vector<1x8x128xf32>
    %cst_36 = arith.constant dense<0.000000e+00> : vector<8x128xf32>
    %168 = vector.multi_reduction <add>, %167, %cst_36 [0] : vector<1x8x128xf32> to vector<8x128xf32>
    %c0_37 = arith.constant 0 : index
    %c0_38 = arith.constant 0 : index
    %c0_39 = arith.constant 0 : index
    %c0_40 = arith.constant 0 : index
    %169 = vector.load %arg5[%c0_37, %c0_38, %c0_39, %c0_40] : memref<1x2x8x128xf32, #tpu.memory_space<vmem>>, vector<1x1x8x128xf32>
    %170 = vector.shape_cast %169 : vector<1x1x8x128xf32> to vector<8x128xf32>
    %171 = arith.addf %170, %166 : vector<8x128xf32>
    %c0_41 = arith.constant 0 : index
    %c0_42 = arith.constant 0 : index
    %c0_43 = arith.constant 0 : index
    %c0_44 = arith.constant 0 : index
    %172 = vector.load %arg5[%c0_41, %c0_42, %c0_43, %c0_44] : memref<1x2x8x128xf32, #tpu.memory_space<vmem>>, vector<1x1x8x128xf32>
    %173 = vector.shape_cast %172 : vector<1x1x8x128xf32> to vector<8x128xf32>
    %174 = vector.shape_cast %171 : vector<8x128xf32> to vector<1x1x8x128xf32>
    tpu.vector_store %arg5[%c0_41, %c0_42, %c0_43, %c0_44], %174 {strides = array<i32>} : memref<1x2x8x128xf32, #tpu.memory_space<vmem>>, vector<1x1x8x128xf32>,
    %c0_45 = arith.constant 0 : index
    %c1 = arith.constant 1 : index
    %c0_46 = arith.constant 0 : index
    %c0_47 = arith.constant 0 : index
    %175 = vector.load %arg5[%c0_45, %c1, %c0_46, %c0_47] : memref<1x2x8x128xf32, #tpu.memory_space<vmem>>, vector<1x1x8x128xf32>
    %176 = vector.shape_cast %175 : vector<1x1x8x128xf32> to vector<8x128xf32>
    %177 = arith.addf %176, %168 : vector<8x128xf32>
    %c0_48 = arith.constant 0 : index
    %c1_49 = arith.constant 1 : index
    %c0_50 = arith.constant 0 : index
    %c0_51 = arith.constant 0 : index
    %178 = vector.load %arg5[%c0_48, %c1_49, %c0_50, %c0_51] : memref<1x2x8x128xf32, #tpu.memory_space<vmem>>, vector<1x1x8x128xf32>
    %179 = vector.shape_cast %178 : vector<1x1x8x128xf32> to vector<8x128xf32>
    %180 = vector.shape_cast %177 : vector<8x128xf32> to vector<1x1x8x128xf32>
    tpu.vector_store %arg5[%c0_48, %c1_49, %c0_50, %c0_51], %180 {strides = array<i32>} : memref<1x2x8x128xf32, #tpu.memory_space<vmem>>, vector<1x1x8x128xf32>,
    return
  }
  func.func @transform_0(%arg0: i32, %arg1: i32) -> (i32, i32, i32, i32) {
    %c0_i32 = arith.constant 0 : i32
    %c0_i32_0 = arith.constant 0 : i32
    %c0_i32_1 = arith.constant 0 : i32
    return %arg0, %c0_i32, %arg1, %c0_i32_0 : i32, i32, i32, i32
  }
  func.func @transform_1(%arg0: i32, %arg1: i32) -> (i32, i32, i32, i32) {
    %c0_i32 = arith.constant 0 : i32
    %c0_i32_0 = arith.constant 0 : i32
    %c0_i32_1 = arith.constant 0 : i32
    return %arg0, %c0_i32, %arg1, %c0_i32_0 : i32, i32, i32, i32
  }
  func.func @transform_2(%arg0: i32, %arg1: i32) -> (i32, i32, i32, i32) {
    %c0_i32 = arith.constant 0 : i32
    %c0_i32_0 = arith.constant 0 : i32
    %c0_i32_1 = arith.constant 0 : i32
    %c0_i32_2 = arith.constant 0 : i32
    return %arg0, %c0_i32, %c0_i32_0, %c0_i32_1 : i32, i32, i32, i32
  }
  func.func @transform_3(%arg0: i32, %arg1: i32) -> (i32, i32, i32, i32) {
    %c0_i32 = arith.constant 0 : i32
    %c0_i32_0 = arith.constant 0 : i32
    %c0_i32_1 = arith.constant 0 : i32
    %c0_i32_2 = arith.constant 0 : i32
    return %arg0, %c0_i32, %c0_i32_0, %c0_i32_1 : i32, i32, i32, i32
  }
}

</mosaic_0001>

<bundles_post_ra>
// kernel: tpu_custom_call.1
= control target key start
LH: loop header
LB: loop body
LE: loop exit
PB: predicated region body
PF: predicated region fallthrough
CT: control target
= control target key end

     0   :  { %s1172_s0 = inlined_call_operand.hbm [shape: f32[2,2,16,128], index: 0, kind: input, shape index: {}]   ;;  %s1173_s1 = inlined_call_operand.hbm [shape: f32[2,3,16,128], index: 1, kind: input, shape index: {}]   ;;  %s1174_s2 = inlined_call_operand.vmem [shape: f32[2,2,5,128], index: 2, kind: input, shape index: {}]   ;;  %s1175_s3 = inlined_call_operand.hbm [shape: f32[2,2,8,128], index: 3, kind: output, shape index: {}]  }
   0x1   :  { %1183 = sst [smem:[#allocation19_spill]] %s1172_s0 }
   0x2   :  { %1184 = sst [smem:[#allocation20_spill]] %s1175_s3 }
   0x3   :  { %8 = vsyncpa [#allocation3], 0 }
   0x4   :  { %10 = vsyncpa [#allocation3 + $0x1], 0 }
   0x5   :  { %11 = vsyncpa [#allocation6], 0 }
   0x6   :  { %13 = vsyncpa [#allocation6 + $0x1], 0 }
   0x7   :  { %14 = vsyncpa [#allocation4], 0 }
   0x8   :  { %16 = vsyncpa [#allocation4 + $0x1], 0  ;;  %s881_s12 = smov 0   ;;  %s883_s13 = smov 0  }
   0x9   :  { %s885_s14 = smov 0   ;;  %s887_s15 = smov 0  }
   0xa   :  { %s889_s16 = smov 0   ;;  %s891_s17 = smov 0  }
   0xb   :  { %s893_s18 = smov 0   ;;  %s895_s19 = smov 0  }
   0xc   :  { %s897_s20 = smov 0   ;;  %s899_s21 = smov 0  }
   0xd   :  { %s901_s22 = smov 0  }
   0xe LB: > { %1185 = sst [smem:[#allocation11_spill]] %s809_s12  ;;  %s524_s23 = sadd.s32 4294967295, %s849_s22   ;;  %s849_s22 = sphi %s901_s22, %s22_s22   ;;  %s845_s21 = sphi %s899_s21, %s1218_s21   ;;  %s841_s20 = sphi %s897_s20, %s1217_s20   ;;  %s837_s19 = sphi %s895_s19, %s1216_s19   ;;  %s833_s18 = sphi %s893_s18, %s1215_s18   ;;  %s829_s17 = sphi %s891_s17, %s1208_s17   ;;  %s825_s16 = sphi %s889_s16, %s1214_s16   ;;  %s821_s15 = sphi %s887_s15, %s1213_s15   ;;  %s817_s14 = sphi %s885_s14, %s1206_s14   ;;  %s813_s13 = sphi %s883_s13, %s1212_s13   ;;  %s809_s12 = sphi %s881_s12, %s1211_s12  }
   0xf   : > { %1186 = sst [smem:[#allocation12_spill]] %s817_s14  ;;  %s525_s24 = sadd.s32 4294967294, %s849_s22  }
  0x10   : > { %1187 = sst [smem:[#allocation13_spill]] %s829_s17  ;;  %s31_s25 = sadd.s32 1, %s841_s20 }
  0x11   : > { %s34_s26 = sadd.s32 1, %s845_s21  ;;  %p32_p0 = scmp.ge.s32.totalorder %s31_s25, 2 }
  0x12   : > { %s43_s27 = sadd.s32 1, %s829_s17  ;;  %p50_p1 = scmp.ne.s32.totalorder %s829_s17, %s825_s16 }
  0x13   : > { %p51_p2 = scmp.eq.s32.totalorder %s849_s22, 0  ;;  %s1220_s25 = smov (%p32_p0, %s31_s25), 0 }
  0x14   : > { %1188 = sst [smem:[#allocation14_spill]] %s1220_s25  ;;  %s1222_s26 = smov (!%p32_p0, %s34_s26), %s845_s21 }
  0x15   : > { %s39_s28 = ssub.s32 %s841_s20, %s1220_s25  ;;  %p947_p3 = por %p51_p2, %p50_p1 }
  0x16   : > { %p36_p4 = scmp.ge.s32.totalorder %s1222_s26, 2  ;;  %p56_p5 = scmp.ne.s32.totalorder %s825_s16, %s821_s15 }
  0x17   : > { %p57_p6 = scmp.eq.s32.totalorder %s524_s23, 0  ;;  %s123_s30 = sadd.s32 1, %s817_s14 }
  0x18   : > { %s1224_s26 = smov (%p36_p4, %s1222_s26), 0  ;;  %p133_p8 = scmp.ne.s32.totalorder %s817_s14, %s813_s13 }
  0x19   : > { %1190 = sst [smem:[#allocation15_spill]] %s1224_s26  ;;  %p955_p7 = por %p57_p6, %p56_p5 }
  0x1a   : > { %s38_s5 = ssub.s32 %s845_s21, %s1224_s26  ;;  %p134_p9 = scmp.eq.s32.totalorder %s524_s23, 3 }
  0x1b   : > { %s40_s6 = sor.u32 %s39_s28, %s38_s5  ;;  %p121_p10 = scmp.eq.s32.totalorder %s38_s5, 0 }
  0x1c   : > { %p41_p11 = scmp.eq.s32.totalorder %s40_s6, 0  ;;  %p963_p12 = por %p134_p9, %p133_p8 }
  0x1d   : > { %s968_s8 = scalar_select %p121_p10, %s817_s14, %s123_s30  }
  0x1e   : > { %s971_s9 = scalar_select %p41_p11, %s829_s17, %s43_s27  }
  0x1f   : > { %1193 = sst [smem:[#allocation16_spill]] %s968_s8  ;;  %p139_p13 = scmp.ne.s32.totalorder %s813_s13, %s809_s12 }
  0x20   : > { %1194 = sst [smem:[#allocation17_spill]] %s971_s9  ;;  %p140_p0 = scmp.eq.s32.totalorder %s525_s24, 3 }
  0x21   : > { %p568_p1 = scmp.lt.s32.totalorder %s849_s22, 4  ;;  %s981_s11 = sand.u32 1, %s829_s17  }
  0x22   : > { %p976_p2 = por %p140_p0, %p139_p13  ;;  %s528_s15 = sshll.u32 %s981_s11, 4 }
  0x23   : > { %s529_s23 = sshll.u32 %s845_s21, 2  ;;  %s164_s5 = scalar_lea.vmem [#allocation2], %s528_s15 }
  0x24   : > { %s1195_s10 = scalar_select %p976_p2, 1, 0 }
  0x25   : > { %s169_s28 = sadd.s32 %s841_s20, %s529_s23  ;;  %s172_s6 = sshll.u32 %s164_s5, 4  ;;  %s173_s6 = int_to_ptr.vmem [resolvable:$true] %s172_s6 }
  0x26   : > { %1196 = sst [smem:[#allocation18_spill]] %s1195_s10  ;;  %s530_s30 = sshll.u32 %s169_s28, 7 }
  0x27   : > { %s1197_s0 = sld [smem:[#allocation19_spill]]  ;;  %p991_p4 = pnand %p568_p1, %p947_p3 }
  0x28   : > { %s161_s9 = scalar_lea.sflag [#allocation3], %s981_s11  ;;  %s682_s17 = scalar_lea.vmem %s173_s6, 256 }
  0x29   : > { %p671_p5 = pneg %p991_p4  ;;  %p683_p6 = scmp.ne.s32.totalorder %s173_s6, %s682_s17 }
  0x2a   : > { %s851_s15 = smov [#allocation2]  }
  0x2b   : > { %p685_p8 = pnand %p683_p6, %p671_p5  ;;  %s687_s23 = sshll.u32 %s851_s15, 4  ;;  %s688_s23 = int_to_ptr.vmem [resolvable:$false] %s687_s23 }
  0x2c   : > { %s689_s26 = scalar_lea.vmem %s688_s23, 512  ;;  %p690_p10 = scmp.lt.s32.totalorder %s173_s6, %s688_s23 }
  0x2d   : > { %s171_s24 = scalar_lea.hbm %s1197_s0, %s530_s30  ;;  %p686_p9 = pneg %p685_p8 }
  0x2e   : > { %p691_p3 = scmp.lt.s32.totalorder %s689_s26, %s682_s17 }
  0x30   : > { %p692_p11 = por %p691_p3, %p690_p10 }
  0x32   : > { %p693_p13 = pnand %p692_p11, %p686_p9 }
  0x34   : > { %696 = shalt.err (!%p693_p13)
}
  0x35   : > { %s852_s29 = smov 256   ;;  %s853_s28 = smov 128  }
  0x36   : > { %s854_s5 = smov 8   ;;  %p532_p0 = scmp.ge.s32.totalorder %s849_s22, 1 }
  0x37   : > { %560 = dma.hbm_to_vmem [thread:$0]  (!%p991_p4), %s171_s24, 256, %s173_s6, %s161_s9, %s852_s29, %s853_s28, %s854_s5  }
  0x38   : > { %p210_p1 = scmp.lt.s32.totalorder %s849_s22, 5  ;;  %s548_s17 = smul.u32 24, %s981_s11 }
  0x39   : > { %s549_s27 = smul.u32 6, %s845_s21  ;;  %s183_s12 = scalar_lea.sflag [#allocation6], %s981_s11 }
  0x3a   : > { %p1009_p6 = pnand %p532_p0, %p210_p1  ;;  %s186_s23 = scalar_lea.vmem [#allocation5], %s548_s17 }
  0x3b   : > { %s191_s15 = sadd.s32 %s841_s20, %s549_s27  ;;  %s194_s26 = sshll.u32 %s186_s23, 4  ;;  %s195_s26 = int_to_ptr.vmem [resolvable:$true] %s194_s26 }
  0x3c   : > { %s531_s0 = sshll.u32 %s191_s15, 7  ;;  %s710_s3 = scalar_lea.vmem %s195_s26, 384 }
  0x3d   : > { %s193_s10 = scalar_lea.hbm %s1173_s1, %s531_s0  ;;  %p711_p8 = scmp.ne.s32.totalorder %s195_s26, %s710_s3 }
  0x3e   : > { %s855_s9 = smov [#allocation5]  }
  0x3f   : > { %p713_p9 = pnand %p711_p8, %p671_p5  ;;  %s715_s6 = sshll.u32 %s855_s9, 4  ;;  %s716_s6 = int_to_ptr.vmem [resolvable:$false] %s715_s6 }
  0x40   : > { %s717_s24 = scalar_lea.vmem %s716_s6, 768  ;;  %p718_p3 = scmp.lt.s32.totalorder %s195_s26, %s716_s6 }
  0x41   : > { %p714_p10 = pneg %p713_p9  ;;  %p719_p11 = scmp.lt.s32.totalorder %s717_s24, %s710_s3 }
  0x43   : > { %p720_p13 = por %p719_p11, %p718_p3 }
  0x45   : > { %p721_p0 = pnand %p720_p13, %p714_p10 }
  0x47   : > { %724 = shalt.err (!%p721_p0)
}
  0x48   : > { %563 = dma.hbm_to_vmem [thread:$0]  (!%p991_p4), %s193_s10, 384, %s195_s26, %s183_s12, %s852_s29, %s853_s28, %s854_s5  }
  0x49   : > { %214 = sbr.rel (%p1009_p6) target bundleno = 260 (0x104), region = 32  ;;  %s216_s0 = sand.u32 (!%p1009_p6), 1, %s825_s16  }
  0x4a   : > { %s533_s14 = sshll.u32 (!%p1009_p6), %s216_s0, 4  ;;  %s217_s8 = scalar_lea.sflag (!%p1009_p6), [#allocation3], %s216_s0 }
  0x4b   : > { %s1030_s11 = scalar_lea.vmem (!%p1009_p6), [#allocation2], %s533_s14 }
  0x4e   : > { %796 = dma.done.wait (%p955_p7), %s217_s8, 256  }
  0x4f   : > { %798 = vsyncadd (%p955_p7), %s217_s8, 4294967040  ;;  %s550_s3 = smul.u32 24, %s216_s0  ;;  %s226_s25 = scalar_lea.sflag [#allocation6], %s216_s0 }
  0x51   : > { %s229_s17 = scalar_lea.vmem [#allocation5], %s550_s3 }
  0x52   : > { %800 = dma.done.wait (%p955_p7), %s226_s25, 384  }
  0x53   : > { %802 = vsyncadd (%p955_p7), %s226_s25, 4294966912  ;;  %s259_s12 = sand.u32 1, %s813_s13   ;;  %p262_p4 = scmp.lt.s32.totalorder %s837_s19, 1 }
  0x54   : > { %s534_s10 = sshll.u32 %s259_s12, 4  ;;  %p537_p5 = scmp.ne.s32.totalorder %s833_s18, 0 }
  0x55   : > { %s263_s29 = scalar_select %p262_p4, %s837_s19, 1 }
  0x56   : > { %s1048_s15 = scalar_lea.vmem [#allocation7], %s534_s10  ;;  %270 = sbr.rel (%p537_p5) target bundleno = 93 (0x5d), region = 44 }
  0x57   : > { %s546_s28 = sshll.u32 %s263_s29, 4 }
  0x58   : > { %s266_s27 = scalar_lea.vmem %s1174_s2, %s546_s28 }
  0x5b   : > { %v856_v0 = vmov 0.0  }
  0x5c   : > { %271 = vst [vmem:[%s1048_s15] sm:$0xff] %v856_v0  ;;  %272 = vst [vmem:[%s1048_s15 + $0x8] sm:$0xff] %v856_v0 }
  0x5d PF: > { %v1053_v1 = vld [vmem:[%s229_s17] sm:$0xff]  ;;  %s538_s4 = sshll.u32 %s833_s18, 3  ;;  %v281_v2 = vlaneseq  ;;  %v1056_v3 = vld [vmem:[%s229_s17 + $0x10] sm:$0xff]  ;;  %s857_s26 = smov 127   ;;  %v1060_v5 = vld [vmem:[%s229_s17 + $0x8] sm:$0xff] }
  0x5e   : > { %s279_s23 = scalar_lea.vmem %s266_s27, %s538_s4  ;;  %297 = vrot.lane.b32.xlu0 %v1053_v1, %s857_s26  ;;  %307 = vrot.lane.b32.xlu1 %v1056_v3, %s857_s26  ;;  %v1063_v6 = vld [vmem:[%s1030_s11] sm:$0xff]  ;;  %v340_v8 = vrot.slane %v1053_v1, 1  ;;  %v349_v9 = vrot.slane %v1060_v5, 1  ;;  %v358_v13 = vrot.slane %v1056_v3, 1  ;;  %v1071_v17 = vld [vmem:[%s1030_s11 + $0x8] sm:$0xff]  ;;  %s547_s18 = sshll.u32 %s837_s19, 8 }
  0x5f   : > { %v282_v4 = vshrl.u32 %v281_v2, 7  ;;  %v280_v7 = vld [vmem:[%s279_s23] sm:$0x1f]  ;;  %v284_v18 = vand.u32 127, %v281_v2  ;;  %v285_v19 = vstv %s538_s4  ;;  %v331_v37 = vrot.slane %v1071_v17, 1  ;;  %s399_s9 = sshll.u32 %s1048_s15, 4  ;;  %s1107_s9 = int_to_ptr.vmem [resolvable:$true] %s399_s9 }
  0x60   : > { %v321_v39 = vrot.slane %v1063_v6, 1  ;;  %s1202_s0 = sld [smem:[#allocation20_spill]]  ;;  %s1112_s19 = scalar_lea.sflag [#allocation4], %s259_s12 }
  0x61   : > { %v343_v10 = vsub.s32 2, %v282_v4  ;;  %v352_v11 = vsub.s32 3, %v282_v4  ;;  %v361_v12 = vsub.s32 4, %v282_v4  ;;  %vm322_vm0 = vcmp.eq.s32.totalorder %v282_v4, 7  ;;  %s725_s8 = scalar_lea.vmem %s1107_s9, 256  ;;  %s858_s11 = smov [#allocation7]  }
  0x62   : > { %302 = vrot.lane.b32.xlu0 %v1060_v5, %s857_s26  ;;  %287 = vrot.lane.b32.xlu1 %v1063_v6, %s857_s26  ;;  %v286_v23 = vadd.s32 %v285_v19, %v282_v4  ;;  %vm312_vm1 = vcmp.lt.s32.totalorder %v284_v18, 15  ;;  %v334_v32 = vsub.s32 1, %v282_v4  ;;  %v325_v33 = vsub.s32 0, %v282_v4  ;;  %p726_p7 = scmp.ne.s32.totalorder %s1107_s9, %s725_s8  ;;  %s729_s3 = sshll.u32 %s858_s11, 4  ;;  %s730_s3 = int_to_ptr.vmem [resolvable:$false] %s729_s3 }
  0x63   : > { %v344_v14 = vrot.slane %v280_v7, %v343_v10  ;;  %v353_v15 = vrot.slane %v280_v7, %v352_v11  ;;  %v362_v16 = vrot.slane %v280_v7, %v361_v12  ;;  %vm367_vm4 = vcmp.lt.s32.totalorder %v284_v18, 16  ;;  %v539_v51 = vld [vmem:[%s1048_s15 + $0x8] sm:$0xff]  ;;  %s731_s25 = scalar_lea.vmem %s730_s3, 512  ;;  %p732_p8 = scmp.lt.s32.totalorder %s1107_s9, %s730_s3 }
  0x64   : > { %vm313_vm2 = vcmp.lt.s32.totalorder %v286_v23, 16  ;;  %v335_v36 = vrot.slane %v280_v7, %v334_v32  ;;  %v326_v38 = vrot.slane %v280_v7, %v325_v33  ;;  %vm368_vm5 = vcmp.lt.s32.totalorder %v286_v23, 15  ;;  %p727_p1 = pnand %p726_p7, %p963_p12  ;;  %p733_p9 = scmp.lt.s32.totalorder %s731_s25, %s725_s8 }
  0x65   : > { %v345_v20 = vsel %vm322_vm0, %v344_v14, %v340_v8  ;;  %v354_v21 = vsel %vm322_vm0, %v353_v15, %v349_v9  ;;  %v363_v22 = vsel %vm322_vm0, %v362_v16, %v358_v13  ;;  %vm1080_vm3 = vmand %vm312_vm1, %vm313_vm2  ;;  %v378_v13 = vld [vmem:[%s1048_s15] sm:$0xff] }
  0x66   : > { %v346_v24 = vsub.f32 %v1053_v1, %v345_v20  ;;  %v355_v25 = vsub.f32 %v1060_v5, %v354_v21  ;;  %v364_v26 = vsub.f32 %v1056_v3, %v363_v22  ;;  %292 = vrot.lane.b32.xlu0 %v1071_v17, %s857_s26  ;;  %v336_v42 = vsel %vm322_vm0, %v335_v36, %v331_v37  ;;  %vm369_vm6 = vmand %vm367_vm4, %vm368_vm5  ;;  %s1105_s14 = scalar_lea.hbm %s1202_s0, %s547_s18  ;;  %p728_p6 = pneg %p727_p1 }
  0x67   : > { %v327_v43 = vsel %vm322_vm0, %v326_v38, %v321_v39  ;;  %v337_v44 = vsub.f32 %v1071_v17, %v336_v42  ;;  %p734_p10 = por %p733_p9, %p732_p8 }
  0x68   : > { %v347_v27 = vand.u32 2147483647, %v346_v24  ;;  %v356_v28 = vand.u32 2147483647, %v355_v25  ;;  %v365_v29 = vand.u32 2147483647, %v364_v26  ;;  %v328_v45 = vsub.f32 %v1063_v6, %v327_v43 }
  0x69   : > { %v338_v46 = vand.u32 2147483647, %v337_v44  ;;  %p735_p3 = pnand %p734_p10, %p728_p6 }
  0x6a   : > { %v357_v31 = vadd.f32 %v356_v28, %v347_v27  ;;  %v329_v47 = vand.u32 2147483647, %v328_v45 }
  0x6c   : > { %v366_v34 = vadd.f32 %v365_v29, %v357_v31  ;;  %v339_v48 = vadd.f32 %v338_v46, %v329_v47 }
  0x6e   : > { %v370_v35 = vmul.f32 0.33333334, %v366_v34 }
  0x70   : > { %v371_v40 = vmul.f32 -150.0, %v370_v35 }
  0x72   : > { %v372_v41 = vmul.f32 1.442695, %v371_v40 }
  0x74   : > { %665 = vpow2.f32 %v372_v41 }
  0x81   : > { %v666_v49 = vpop.eup %665 }
  0x82   : > { %v374_v50 = vmul.f32 %v666_v49, %v339_v48 }
  0x84   : > { %v375_v52 = vsel %vm369_vm6, %v374_v50, 0.0 }
  0x85   : > { %v383_v53 = vadd.f32 %v539_v51, %v375_v52 }
  0x87   : > { %540 = vst [vmem:[%s1048_s15 + $0x8] sm:$0xff] %v383_v53 }
  0xd0   : > { %v298_v54 = vpop.permute.xlu0 %297  ;;  %v308_v55 = vpop.permute.xlu1 %307 }
  0xd1   : > { %v299_v56 = vsub.f32 %v1053_v1, %v298_v54  ;;  %v309_v57 = vsub.f32 %v1056_v3, %v308_v55 }
  0xd3   : > { %v300_v60 = vand.u32 2147483647, %v299_v56  ;;  %v310_v62 = vand.u32 2147483647, %v309_v57 }
  0xd4   : > { %v303_v58 = vpop.permute.xlu0 %302  ;;  %v288_v9 = vpop.permute.xlu1 %287 }
  0xd5   : > { %v304_v59 = vsub.f32 %v1060_v5, %v303_v58  ;;  %v289_v3 = vsub.f32 %v1063_v6, %v288_v9 }
  0xd7   : > { %v305_v61 = vand.u32 2147483647, %v304_v59  ;;  %v290_v10 = vand.u32 2147483647, %v289_v3 }
  0xd8   : > { %v293_v8 = vpop.permute.xlu0 %292 }
  0xd9   : > { %v306_v63 = vadd.f32 %v305_v61, %v300_v60  ;;  %v294_v1 = vsub.f32 %v1071_v17, %v293_v8 }
  0xdb   : > { %v311_v0 = vadd.f32 %v310_v62, %v306_v63  ;;  %v295_v5 = vand.u32 2147483647, %v294_v1 }
  0xdd   : > { %v315_v2 = vmul.f32 0.33333334, %v311_v0  ;;  %v296_v11 = vadd.f32 %v295_v5, %v290_v10 }
  0xdf   : > { %v316_v4 = vmul.f32 -150.0, %v315_v2 }
  0xe1   : > { %v317_v7 = vmul.f32 1.442695, %v316_v4 }
  0xe3   : > { %667 = vpow2.f32 %v317_v7 }
  0xf0   : > { %v668_v12 = vpop.eup %667 }
  0xf1   : > { %v319_v14 = vmul.f32 %v668_v12, %v296_v11 }
  0xf3   : > { %v320_v15 = vsel %vm1080_vm3, %v319_v14, 0.0 }
  0xf4   : > { %v379_v6 = vadd.f32 %v378_v13, %v320_v15 }
  0xf6   : > { %380 = vst [vmem:[%s1048_s15] sm:$0xff] %v379_v6 }
  0xf7   : > { %738 = shalt.err (!%p735_p3)
}
  0xf8   : > { %s739_s17 = scalar_lea.hbm %s1105_s14, 256  ;;  %s743_s29 = scalar_lea.hbm %s1202_s0, 512 }
  0xf9   : > { %p740_p11 = scmp.ne.s32.totalorder %s1105_s14, %s739_s17  ;;  %p744_p4 = scmp.lt.s32.totalorder %s1105_s14, %s1202_s0 }
  0xfa   : > { %p745_p5 = scmp.lt.s32.totalorder %s743_s29, %s739_s17 }
  0xfb   : > { %p741_p13 = pnand %p740_p11, %p963_p12 }
  0xfc   : > { %p746_p7 = por %p745_p5, %p744_p4 }
  0xfd   : > { %p742_p0 = pneg %p741_p13 }
  0xff   : > { %p747_p1 = pnand %p746_p7, %p742_p0 }
 0x101   : > { %750 = shalt.err (!%p747_p1)
}
 0x102   : > { %s859_s30 = smov 128   ;;  %s860_s27 = smov 8  }
 0x103   : > { %555 = dma.vmem_to_hbm [thread:$0]  (%p963_p12), %s1107_s9, 256, %s1105_s14, %s1112_s19, %s859_s30, %s859_s30, %s860_s27  }
 0x104 PF: > { %s1203_s15 = sld [smem:[#allocation11_spill]]  ;;  %p569_p6 = scmp.ge.s32.totalorder %s849_s22, 2 }
 0x106   : > { %p565_p8 = pnand %p569_p6, %p976_p2 }
 0x108   : > { %p566_p9 = pneg %p565_p8 }
 0x10a   : > { %s414_s23 = sand.u32 1, %s1203_s15  }
 0x10b   : > { %s415_s26 = scalar_lea.sflag [#allocation4], %s414_s23 }
 0x10c   : > { %804 = dma.done.wait (%p566_p9), %s415_s26, 256  }
 0x10d   : > { %806 = vsyncadd (%p566_p9), %s415_s26, 4294967040  ;;  %s22_s22 = sadd.s32 1, %s849_s22   ;;  %s1205_s18 = sld [smem:[#allocation12_spill]] }
 0x10e   : > { %p19_p10 = scmp.ge.s32.totalorder %s22_s22, 6   ;;  %s1206_s14 = sld [smem:[#allocation16_spill]] }
 0x10f   : > { %s1207_s7 = sld [smem:[#allocation13_spill]]  ;;  %s1211_s12 = smov %s813_s13 }
 0x110   : > { %s1208_s17 = sld [smem:[#allocation17_spill]]  ;;  %s1213_s15 = smov %s825_s16 }
 0x111   : > { %s1209_s9 = sld [smem:[#allocation14_spill]]  ;;  %s1216_s19 = smov %s845_s21 }
 0x112   : > { %s1210_s6 = sld [smem:[#allocation15_spill]] }
 0x113   : > { %s1212_s13 = smov %s1205_s18  ;;  %s1215_s18 = smov %s841_s20 }
 0x114   :  { %21 = sbr.rel (!%p19_p10) target bundleno = 14 (0xe), region = 99 }
 0x115   : > { %s1214_s16 = smov %s1207_s7 }
 0x117   : > { %s1217_s20 = smov %s1209_s9 }
 0x118   : > { %s1218_s21 = smov %s1210_s6 }
 0x119   :  { %420 = vsyncpa [#allocation3], 1 }
 0x11a   :  { %422 = vsyncpa [#allocation3 + $0x1], 1 }
 0x11b   :  { %423 = vsyncpa [#allocation6], 1 }
 0x11c   :  { %425 = vsyncpa [#allocation6 + $0x1], 1 }
 0x11d   :  { %426 = vsyncpa [#allocation4], 1 }
 0x11e   :  { %428 = vsyncpa [#allocation4 + $0x1], 1 }

</bundles_post_ra>
